<compile_context>
chip_gen: v7x
topology: tpu7x:2x2x1
jax: 0.10.0
libtpu: 0.0.40
codegen_flags: <defaults>
</compile_context>

<pallas_src>
import functools

import jax
import jax.numpy as jnp
import numpy as np
from jax.experimental import pallas as pl
from jax.experimental.pallas import tpu as pltpu


def _round_up(a, b):
    return (a + b - 1) // b * b


def _vmem_capacity_bytes():
    """Best-effort physical VMEM size (per TensorCore); conservative fallback."""
    try:
        info = pltpu.get_tpu_info()
        for attr in ("vmem_capacity_bytes", "vmem_bytes", "vmem_capacity"):
            v = getattr(info, attr, None)
            if v:
                return int(v)
    except Exception:
        pass
    return 64 << 20  # v7x-sized (smallest current gen) -> safe everywhere


def gemp_kernel(p_ref, x_ref, o_ref, acc_ref, *, eps, hw, tile_s, chunk,
                needs_mask, p_static):
    s = pl.program_id(1)
    rows = x_ref.shape[0]

    # Init the per-row lane-wide accumulator on the first spatial step.
    @pl.when(s == 0)
    def _():
        acc_ref[...] = jnp.zeros_like(acc_ref)

    if p_static is None:
        p = p_ref[0]          # learnable exponent, runtime scalar in SMEM
        int_p = None
    else:
        p = float(p_static)
        rp = round(p)
        int_p = int(rp) if (abs(p - rp) < 1e-12 and 1 <= rp <= 16) else None

    def pow_p(v):
        if int_p is not None:
            # Static integer exponent: exponentiation by squaring (VALU only,
            # keeps the kernel off the single EUP slot -> matters on v7x).
            res, base, m = None, v, int_p
            while m:
                if m & 1:
                    res = base if res is None else res * base
                m >>= 1
                if m:
                    base = base * base
            return res
        return jnp.exp(p * jnp.log(v))          # x^p on the EUP (x > 0)

    # Hot loop: process the spatial tile in `chunk`-wide lane slices so f32
    # intermediates stay small; fold each chunk down to 128 lanes with plain
    # VALU adds (no per-step XLU reduce, no 1-lane masked stores).
    n_chunks = tile_s // chunk
    partial = jnp.zeros((rows, 128), jnp.float32)
    for j in range(n_chunks):
        xj = x_ref[:, pl.ds(j * chunk, chunk)].astype(jnp.float32)
        xc = jnp.maximum(xj, eps)               # clamp(min=eps) -> strictly > 0
        xp = pow_p(xc)
        if needs_mask:
            col = jax.lax.broadcasted_iota(jnp.int32, (rows, chunk), 1) \
                  + (s * tile_s + j * chunk)
            xp = jnp.where(col < hw, xp, 0.0)   # zero out padded lanes
        folded = xp[:, 0:128]
        for t in range(1, chunk // 128):
            folded = folded + xp[:, t * 128:(t + 1) * 128]
        partial = partial + folded
    acc_ref[...] += partial

    # Finalize on the last spatial step: lane reduce + mean + ^(1/p).
    @pl.when(s == pl.num_programs(1) - 1)
    def _():
        total = jnp.sum(acc_ref[...], axis=-1, keepdims=True)   # (rows, 1)
        mean = total * (1.0 / hw)
        inv_p = (1.0 / p) if p_static is not None else 1.0 / p  # scalar
        o_ref[...] = jnp.exp(jnp.log(mean) * inv_p).astype(o_ref.dtype)


def gemp(x, p, eps=1e-6, p_static=None):
    """x: (B, C, H, W). p: shape-(1,) float (the nn.Parameter).

    p_static: optional Python scalar; if given (frozen/inference GeM), the
    kernel is specialized (integer p -> multiply-only fast path).
    Returns (B, C, 1, 1) float32.
    """
    B, C, H, W = x.shape
    BC, HW = B * C, H * W
    x_flat = x.reshape(BC, HW)
    itemsize = x.dtype.itemsize

    # --- generation-aware VMEM budget -------------------------------------
    vmem_cap = _vmem_capacity_bytes()
    vmem_limit = int(min(max(vmem_cap // 2, 16 << 20), 48 << 20))

    # --- row tile (sublane-aligned; >=2 blocks for v7x megacore if possible)
    if BC <= 8:
        TILE_R = BC
    else:
        TILE_R = min(512, _round_up(BC, 8))
        if pl.cdiv(BC, TILE_R) < 2 and BC >= 16:
            TILE_R = _round_up(pl.cdiv(BC, 2), 8)

    # --- spatial tile: lane-dense, sized so double-buffered input tiles plus
    #     the (chunked) f32 working set stay well inside the VMEM limit.
    tile_budget = max(1 << 20, min(16 << 20, (vmem_limit - (8 << 20)) // 2))
    max_cols = max(128, tile_budget // (TILE_R * itemsize))
    TILE_S = 128
    for cand in (32768, 16384, 8192, 4096, 2048, 1024, 512, 256, 128):
        if cand <= max_cols:
            TILE_S = cand
            break
    TILE_S = min(TILE_S, _round_up(HW, 128))
    CHUNK = 512 if TILE_S % 512 == 0 else (256 if TILE_S % 256 == 0 else 128)
    needs_mask = (HW % TILE_S) != 0

    grid = (pl.cdiv(BC, TILE_R), pl.cdiv(HW, TILE_S))
    p_arr = jnp.asarray(p, jnp.float32).reshape(1)

    kern = functools.partial(
        gemp_kernel,
        eps=float(eps), hw=int(HW), tile_s=int(TILE_S), chunk=int(CHUNK),
        needs_mask=bool(needs_mask),
        p_static=None if p_static is None else float(p_static))

    fast_int_p = (p_static is not None
                  and abs(float(p_static) - round(float(p_static))) < 1e-12)
    n_trans = (0 if fast_int_p else 2 * BC * HW) + 2 * BC

    out = pl.pallas_call(
        kern,
        out_shape=jax.ShapeDtypeStruct((BC, 1), jnp.float32),
        grid_spec=pltpu.PrefetchScalarGridSpec(
            num_scalar_prefetch=0,
            grid=grid,
            in_specs=[
                pl.BlockSpec(memory_space=pltpu.MemorySpace.SMEM),     # p scalar
                pl.BlockSpec((TILE_R, TILE_S), lambda r, s: (r, s)),   # x tiles
            ],
            out_specs=pl.BlockSpec((TILE_R, 1), lambda r, s: (r, 0)),
            scratch_shapes=[pltpu.VMEM((TILE_R, 128), jnp.float32)],
        ),
        compiler_params=pltpu.CompilerParams(
            dimension_semantics=("parallel", "arbitrary"),
            vmem_limit_bytes=int(vmem_limit),
        ),
        cost_estimate=pl.CostEstimate(
            flops=int(5 * BC * HW),
            transcendentals=int(n_trans),
            bytes_accessed=int(BC * HW * itemsize + BC * 4),
        ),
    )(p_arr, x_flat)

    return out.reshape(B, C, 1, 1)


def gemp_reference(x, p, eps=1e-6):
    xc = jnp.maximum(x, eps)
    m = jnp.mean(xc ** p, axis=(-2, -1), keepdims=True)
    return m ** (1.0 / p)


if __name__ == "__main__":
    key = jax.random.PRNGKey(0)
    eps = 1e-6
    p = jnp.asarray([3.0], jnp.float32)   # GeMP learnable exponent, init = 3

    # Main path: learnable (runtime) p, spatial extent a clean multiple of 128.
    x = jax.random.normal(key, (2, 4, 16, 16), jnp.float32)
    out = gemp(x, p, eps)
    jax.block_until_ready(out)
    ref = gemp_reference(x, p, eps)
    assert out.shape == (2, 4, 1, 1)
    np.testing.assert_allclose(np.asarray(out), np.asarray(ref),
                               rtol=2e-3, atol=1e-6)

    # Masked-lane path (7x7 CNN head) + static integer-p fast path.
    x2 = jax.random.normal(jax.random.PRNGKey(1), (2, 4, 7, 7), jnp.float32)
    out2 = gemp(x2, p, eps, p_static=3.0)
    jax.block_until_ready(out2)
    ref2 = gemp_reference(x2, p, eps)
    np.testing.assert_allclose(np.asarray(out2), np.asarray(ref2),
                               rtol=2e-3, atol=1e-6)

    print("KERNEL_OK")
</pallas_src>

<mosaic_0001>
module attributes {stable_mosaic.version = 11 : i64} {
  func.func @gemp_kernel(%arg0: i32, %arg1: i32, %arg2: memref<1xf32, #tpu.memory_space<smem>>, %arg3: memref<8x256xf32, #tpu.memory_space<vmem>>, %arg4: memref<8x1xf32, #tpu.memory_space<vmem>>, %arg5: memref<8x128xf32, #tpu.memory_space<vmem>>) attributes {dimension_semantics = [#tpu.dimension_semantics<parallel>, #tpu.dimension_semantics<arbitrary>], iteration_bounds = array<i64: 1, 1>, scalar_prefetch = 0 : i64, scratch_operands = 1 : i64, tpu.core_type = #tpu.core_type<tc>, window_params = [{transform_indices = @transform_0, window_bounds = array<i64: 1>}, {transform_indices = @transform_1, window_bounds = array<i64: 8, 256>}, {transform_indices = @transform_2, window_bounds = array<i64: 8, 1>}]} {
    %c0_i32 = arith.constant 0 : i32
    %0 = arith.cmpi eq, %arg1, %c0_i32 : i32
    %1 = arith.extui %0 : i1 to i32
    %c0_i32_0 = arith.constant 0 : i32
    %2 = arith.cmpi ne, %1, %c0_i32_0 : i32
    scf.if %2 {
      %cst_10 = arith.constant 0.000000e+00 : f32
      %22 = vector.broadcast %cst_10 : f32 to vector<8x128xf32>
      %c0_11 = arith.constant 0 : index
      %c0_12 = arith.constant 0 : index
      %23 = vector.load %arg5[%c0_11, %c0_12] : memref<8x128xf32, #tpu.memory_space<vmem>>, vector<8x128xf32>
      tpu.vector_store %arg5[%c0_11, %c0_12], %22 {strides = array<i32>} : memref<8x128xf32, #tpu.memory_space<vmem>>, vector<8x128xf32>,
    } else {
    }
    %c0 = arith.constant 0 : index
    %3 = memref.load %arg2[%c0] : memref<1xf32, #tpu.memory_space<smem>>
    %cst = arith.constant 0.000000e+00 : f32
    %4 = vector.broadcast %cst : f32 to vector<8x128xf32>
    %c0_1 = arith.constant 0 : index
    %c0_2 = arith.constant 0 : index
    %5 = vector.load %arg3[%c0_1, %c0_2] : memref<8x256xf32, #tpu.memory_space<vmem>>, vector<8x256xf32>
    %cst_3 = arith.constant 9.99999997E-7 : f32
    %6 = vector.broadcast %cst_3 : f32 to vector<8x256xf32>
    %7 = arith.maximumf %5, %6 : vector<8x256xf32>
    %8 = math.log %7 : vector<8x256xf32>
    %9 = vector.broadcast %3 : f32 to vector<8x256xf32>
    %10 = arith.mulf %9, %8 : vector<8x256xf32>
    %11 = math.exp %10 : vector<8x256xf32>
    %12 = vector.extract_strided_slice %11 {offsets = [0, 0], sizes = [8, 128], strides = [1, 1]} : vector<8x256xf32> to vector<8x128xf32>
    %13 = vector.extract_strided_slice %11 {offsets = [0, 128], sizes = [8, 128], strides = [1, 1]} : vector<8x256xf32> to vector<8x128xf32>
    %14 = arith.addf %12, %13 : vector<8x128xf32>
    %15 = arith.addf %4, %14 : vector<8x128xf32>
    %c0_4 = arith.constant 0 : index
    %c0_5 = arith.constant 0 : index
    %16 = vector.load %arg5[%c0_4, %c0_5] : memref<8x128xf32, #tpu.memory_space<vmem>>, vector<8x128xf32>
    %17 = arith.addf %16, %15 : vector<8x128xf32>
    %c0_6 = arith.constant 0 : index
    %c0_7 = arith.constant 0 : index
    %18 = vector.load %arg5[%c0_6, %c0_7] : memref<8x128xf32, #tpu.memory_space<vmem>>, vector<8x128xf32>
    tpu.vector_store %arg5[%c0_6, %c0_7], %17 {strides = array<i32>} : memref<8x128xf32, #tpu.memory_space<vmem>>, vector<8x128xf32>,
    %c0_i32_8 = arith.constant 0 : i32
    %19 = arith.cmpi eq, %arg1, %c0_i32_8 : i32
    %20 = arith.extui %19 : i1 to i32
    %c0_i32_9 = arith.constant 0 : i32
    %21 = arith.cmpi ne, %20, %c0_i32_9 : i32
    scf.if %21 {
      %c0_10 = arith.constant 0 : index
      %c0_11 = arith.constant 0 : index
      %22 = vector.load %arg5[%c0_10, %c0_11] : memref<8x128xf32, #tpu.memory_space<vmem>>, vector<8x128xf32>
      %cst_12 = arith.constant dense<0.000000e+00> : vector<8xf32>
      %23 = vector.multi_reduction <add>, %22, %cst_12 [1] : vector<8x128xf32> to vector<8xf32>
      %24 = vector.shape_cast %23 : vector<8xf32> to vector<8x1xf32>
      %cst_13 = arith.constant 3.906250e-03 : f32
      %25 = vector.broadcast %cst_13 : f32 to vector<8x1xf32>
      %26 = arith.mulf %24, %25 : vector<8x1xf32>
      %cst_14 = arith.constant 1.000000e+00 : f32
      %27 = arith.divf %cst_14, %3 : f32
      %28 = math.log %26 : vector<8x1xf32>
      %29 = vector.broadcast %27 : f32 to vector<8x1xf32>
      %30 = arith.mulf %28, %29 : vector<8x1xf32>
      %31 = math.exp %30 : vector<8x1xf32>
      %c0_15 = arith.constant 0 : index
      %c0_16 = arith.constant 0 : index
      %32 = vector.load %arg4[%c0_15, %c0_16] : memref<8x1xf32, #tpu.memory_space<vmem>>, vector<8x1xf32>
      tpu.vector_store %arg4[%c0_15, %c0_16], %31 {strides = array<i32>} : memref<8x1xf32, #tpu.memory_space<vmem>>, vector<8x1xf32>,
    } else {
    }
    return
  }
  func.func @transform_0(%arg0: i32, %arg1: i32) -> i32 {
    %c0_i32 = arith.constant 0 : i32
    %c0_i32_0 = arith.constant 0 : i32
    return %c0_i32 : i32
  }
  func.func @transform_1(%arg0: i32, %arg1: i32) -> (i32, i32) {
    %c0_i32 = arith.constant 0 : i32
    return %arg0, %arg1 : i32, i32
  }
  func.func @transform_2(%arg0: i32, %arg1: i32) -> (i32, i32) {
    %c0_i32 = arith.constant 0 : i32
    %c0_i32_0 = arith.constant 0 : i32
    return %arg0, %c0_i32 : i32, i32
  }
}

</mosaic_0001>

<bundles_post_ra>
// kernel: tpu_custom_call.1
= control target key start
LH: loop header
LB: loop body
LE: loop exit
PB: predicated region body
PF: predicated region fallthrough
CT: control target
= control target key end

     0   :  { %8 = vsyncpa [#allocation5], 0  ;;  %s114_s9 = smov [#allocation4]   ;;  %s148_s0 = inlined_call_operand.<no memory space> [shape: f32[1], index: 0, kind: input, shape index: {}]   ;;  %s149_s1 = inlined_call_operand.hbm [shape: f32[8,256], index: 1, kind: input, shape index: {}]   ;;  %s150_s2 = inlined_call_operand.vmem [shape: f32[8,1], index: 2, kind: output, shape index: {}]  }
   0x1   :  { %s17_s10 = sshll.u32 %s114_s9, 4  ;;  %s90_s13 = scalar_lea.hbm %s149_s1, 256  ;;  %s18_s10 = int_to_ptr.vmem [resolvable:$true] %s17_s10 }
   0x2   :  { %p91_p0 = scmp.ne.s32.totalorder %s149_s1, %s90_s13  ;;  %p94_p1 = scmp.lt.u32.totalorder %s90_s13, %s149_s1 }
   0x4   :  { %p96_p2 = pnand %p94_p1, %p91_p0 }
   0x6   :  { %99 = shalt.err (!%p96_p2)
}
   0x7   :  { %s100_s18 = scalar_lea.vmem %s18_s10, 256  ;;  %p105_p4 = scmp.lt.s32.totalorder %s18_s10, %s18_s10 }
   0x8   :  { %p101_p3 = scmp.ne.s32.totalorder %s18_s10, %s100_s18  ;;  %p106_p5 = scmp.lt.s32.totalorder %s100_s18, %s100_s18 }
   0xa   :  { %p107_p6 = por %p106_p5, %p105_p4 }
   0xc   :  { %p108_p7 = pnand %p107_p6, %p101_p3 }
   0xe   :  { %111 = shalt.err (!%p108_p7)
}
   0xf   :  { %20 = dma.hbm_to_vmem [thread:$0]  %s149_s1, 256, %s18_s10, [#allocation5]  }
  0x10   :  { %112 = dma.done.wait [#allocation5], 256  }
  0x11   :  { %113 = vsyncadd [#allocation5], 4294967040  ;;  %v38_v0 = vstv %s148_s0  ;;  %v30_v1 = vld [vmem:[#allocation4] sm:$0xff]  ;;  %v31_v2 = vld [vmem:[#allocation4 + $0x8] sm:$0xff]  ;;  %vm66_vm0 = vcmask 7168  }
  0x12   :  { %76 = vrcp.f32 %v38_v0  ;;  %v32_v3 = vmax.f32 %v30_v1, 1e-06  ;;  %v33_v4 = vmax.f32 %v31_v2, 1e-06 }
  0x14   :  { %78 = vlog2.f32 %v32_v3 }
  0x15   :  { %80 = vlog2.f32 %v33_v4 }
  0x1c   :  { %v77_v5 = vpop.eup %76 }
  0x1d   :  { %73 = vpush %v77_v5 }
  0x1e   :  { %v79_v6 = vpop.eup %78 }
  0x1f   :  { %v81_v7 = vpop.eup %80  ;;  %v35_v8 = vmul.f32 0.6931472, %v79_v6 }
  0x20   :  { %v37_v9 = vmul.f32 0.6931472, %v81_v7 }
  0x21   :  { %v39_v10 = vmul.f32 %v38_v0, %v35_v8 }
  0x22   :  { %v40_v11 = vmul.f32 %v38_v0, %v37_v9 }
  0x23   :  { %v41_v12 = vmul.f32 1.442695, %v39_v10 }
  0x24   :  { %v43_v13 = vmul.f32 1.442695, %v40_v11 }
  0x25   :  { %82 = vpow2.f32 %v41_v12 }
  0x26   :  { %84 = vpow2.f32 %v43_v13 }
  0x2f   :  { %v83_v14 = vpop.eup %82 }
  0x30   :  { %v85_v15 = vpop.eup %84 }
  0x31   :  { %v45_v16 = vadd.f32 %v85_v15, %v83_v14 }
  0x33   :  { %54 = vadd.xlane.f32.xlu0 %v45_v16 }
  0x4e   :  { %s74_s0 = spop %73 }
  0x4f   :  { %v62_v20 = vstv %s74_s0 }
  0xc0   :  { %v55_v17 = vpop.xlane.xlu0 %54 }
  0xc1   :  { %v56_v18 = vmul.f32 0.00390625, %v55_v17 }
  0xc3   :  { %86 = vlog2.f32 %v56_v18 }
  0xcd   :  { %v87_v19 = vpop.eup %86 }
  0xce   :  { %v61_v21 = vmul.f32 0.6931472, %v87_v19 }
  0xd0   :  { %v63_v22 = vmul.f32 %v62_v20, %v61_v21 }
  0xd2   :  { %v64_v23 = vmul.f32 1.442695, %v63_v22 }
  0xd4   :  { %88 = vpow2.f32 %v64_v23 }
  0xde   :  { %v89_v24 = vpop.eup %88 }
  0xdf   :  { %67 = vst.msk [vmem:[%s150_s2] sm:$0xff] %vm66_vm0, %v89_v24 }
  0xe0   :  { %72 = vsyncpa [#allocation5], 1 }

</bundles_post_ra>
